<compile_context>
chip_gen: v7x
topology: tpu7x:2x2x1
jax: 0.10.0
libtpu: 0.0.40
codegen_flags: <defaults>
</compile_context>

<pallas_src>
import functools

import jax
import jax.numpy as jnp
from jax.experimental import pallas as pl
from jax.experimental.pallas import tpu as pltpu

_MiB = 1024 * 1024


def _reorg_kernel(x_ref, o_ref, *, stride: int, block_rows: int, width: int):
    """Space-to-depth for one row slab.

    Logical input slab:   (C, TH*s, W)    -- TH*s consecutive input rows.
    Logical output slab:  (s*s*C, TH, Wo) -- the TH corresponding output rows.
    The refs may present these with the trailing dims flattened onto the lane
    axis (lane-dense path) or as separate trailing dims (row-slab fallback);
    the element order is identical, so value-level reshapes cover both.
    """
    s, TH, W = stride, block_rows, width
    Wo = W // s
    C = x_ref.shape[0]

    xb = x_ref[...].reshape(C, TH, s, Wo, s)      # (c, th, dh, wo, dw)
    xb = jnp.transpose(xb, (2, 4, 0, 1, 3))       # (dh, dw, c, th, wo)
    # out channel = (dh*s + dw)*C + c  -> matches PyTorch Reorg.
    o_ref[...] = xb.reshape(o_ref.shape)          # one lane-dense store


def _pick_block_rows(Ho: int, Wo: int, row_bytes: int, *,
                     target_bytes: int = 8 * _MiB, min_blocks: int = 1):
    """Choose TH = output rows per grid step.

    Returns (TH, lane_dense).  lane_dense=True means TH == Ho or TH*Wo is a
    multiple of 128, so the flattened-lane (lane-dense) layout satisfies the
    (8,128) block rule exactly.  Otherwise the caller uses the 5-D row-slab
    layout, which is legal for any divisor TH.
    """
    divisors = [d for d in range(Ho, 0, -1) if Ho % d == 0]
    fits = [d for d in divisors if d * row_bytes <= target_bytes]
    dense = [d for d in fits if d == Ho or (d * Wo) % 128 == 0]

    # Prefer lane-dense candidates giving at least `min_blocks` grid steps.
    for d in dense:
        if Ho // d >= min_blocks:
            return d, True
    if dense:
        return dense[0], True
    for d in fits:
        if Ho // d >= min_blocks:
            return d, False
    if fits:
        return fits[0], False
    # Even a single row slab exceeds the budget; take it anyway (the vmem
    # limit is raised accordingly in _reorg_call).
    return 1, (Ho == 1 or Wo % 128 == 0)


def _reorg_call(x: jax.Array, s: int, TH: int, *, lane_dense: bool) -> jax.Array:
    B, C, H, W = x.shape
    Ho, Wo = H // s, W // s
    nblocks = Ho // TH
    itemsize = jnp.dtype(x.dtype).itemsize
    block_bytes = s * s * C * Wo * TH * itemsize
    total_bytes = x.size * itemsize

    kernel = functools.partial(_reorg_kernel, stride=s, block_rows=TH, width=W)

    if lane_dense:
        # Free contiguous reshapes; blocks keep full channel dims second-minor
        # and a 128-aligned (or full-extent) lane dim.
        x_view = x.reshape(B, C, H * W)
        in_spec = pl.BlockSpec((None, C, TH * s * W), lambda b, hb: (b, 0, hb))
        out_shape = jax.ShapeDtypeStruct((B, s * s * C, Ho * Wo), x.dtype)
        out_spec = pl.BlockSpec((None, s * s * C, TH * Wo),
                                lambda b, hb: (b, 0, hb))
    else:
        # Always-legal row-slab layout: trailing block dims == full array dims,
        # the blocked row axis sits at dim -3.
        x_view = x.reshape(B, C, nblocks, TH * s, W)
        in_spec = pl.BlockSpec((None, C, None, TH * s, W),
                               lambda b, hb: (b, 0, hb, 0, 0))
        out_shape = jax.ShapeDtypeStruct((B, s * s * C, nblocks, TH, Wo), x.dtype)
        out_spec = pl.BlockSpec((None, s * s * C, None, TH, Wo),
                                lambda b, hb: (b, 0, hb, 0, 0))

    # in + out, each double-buffered (~4x block), plus headroom; stays inside
    # v7x's 64 MiB physical VMEM for the 8 MiB block target and well inside
    # v5e/v6e's 128 MiB.
    vmem_limit = int(min(max(48 * _MiB, 4 * block_bytes + 4 * _MiB), 128 * _MiB))

    out = pl.pallas_call(
        kernel,
        out_shape=out_shape,
        grid=(B, nblocks),
        in_specs=[in_spec],
        out_specs=out_spec,
        compiler_params=pltpu.CompilerParams(
            dimension_semantics=("parallel", "parallel"),
            vmem_limit_bytes=vmem_limit,
        ),
        cost_estimate=pl.CostEstimate(
            flops=0, transcendentals=0, bytes_accessed=2 * total_bytes),
    )(x_view)
    return out.reshape(B, s * s * C, Ho, Wo)


def reorg(x: jax.Array, stride: int = 2, *,
          block_target_bytes: int = 8 * _MiB) -> jax.Array:
    """Darknet Reorg. x: (B, C, H, W) -> (B, stride*stride*C, H//stride, W//stride)."""
    B, C, H, W = x.shape
    s = int(stride)
    assert H % s == 0 and W % s == 0, "H and W must be divisible by stride"
    Ho, Wo = H // s, W // s
    itemsize = jnp.dtype(x.dtype).itemsize
    # Bytes per output-row slab (== per group of s input rows, all channels).
    row_bytes = s * s * C * Wo * itemsize

    TH, lane_dense = _pick_block_rows(
        Ho, Wo, row_bytes, target_bytes=block_target_bytes,
        min_blocks=2 if B == 1 else 1)

    if lane_dense:
        try:
            return _reorg_call(x, s, TH, lane_dense=True)
        except Exception:
            # Mosaic rejected the flattened-lane relayout for this shape/dtype;
            # fall through to the always-legal row-slab layout.
            pass
    return _reorg_call(x, s, TH, lane_dense=False)


def _reorg_reference(x: jax.Array, s: int) -> jax.Array:
    """Pure-JAX transcription of the PyTorch forward for verification."""
    B, C, H, W = x.shape
    y = x.reshape(B, C, H // s, s, W // s, s)
    y = jnp.transpose(y, (0, 1, 2, 4, 3, 5))                     # transpose(3, 4)
    y = y.reshape(B, C, (H // s) * (W // s), s * s)
    y = jnp.transpose(y, (0, 1, 3, 2))                           # transpose(2, 3)
    y = y.reshape(B, C, s * s, H // s, W // s)
    y = jnp.transpose(y, (0, 2, 1, 3, 4))                        # transpose(1, 2)
    return y.reshape(B, s * s * C, H // s, W // s)


if __name__ == "__main__":
    key = jax.random.PRNGKey(0)
    B, C, H, W = 2, 4, 16, 16
    stride = 2

    x = jax.random.normal(key, (B, C, H, W), dtype=jnp.float32)

    out = jax.block_until_ready(reorg(x, stride=stride))
    expected = _reorg_reference(x, stride)

    assert out.shape == (B, stride * stride * C, H // stride, W // stride), out.shape
    assert out.dtype == x.dtype
    # Pure permutation -> must be bit-exact.
    assert jnp.array_equal(out, expected), "Pallas Reorg mismatch vs reference (f32)"

    # bf16 sanity check (sub-32-bit sublane packing path).
    x_bf16 = x.astype(jnp.bfloat16)
    out_bf16 = jax.block_until_ready(reorg(x_bf16, stride=stride))
    assert out_bf16.dtype == jnp.bfloat16
    assert jnp.array_equal(out_bf16, _reorg_reference(x_bf16, stride)), \
        "Pallas Reorg mismatch vs reference (bf16)"

    # Multi-block lane-dense path (TH < Ho, 128-aligned lane blocks).
    key2 = jax.random.PRNGKey(1)
    x2 = jax.random.normal(key2, (1, 8, 64, 64), dtype=jnp.float32)
    out2 = jax.block_until_ready(reorg(x2, stride=2, block_target_bytes=32 * 1024))
    assert jnp.array_equal(out2, _reorg_reference(x2, 2)), \
        "Pallas Reorg mismatch vs reference (multi-block lane-dense)"

    # Row-slab fallback path (always-legal 5-D layout), exercised explicitly.
    out3 = jax.block_until_ready(_reorg_call(x2, 2, 8, lane_dense=False))
    assert jnp.array_equal(out3, _reorg_reference(x2, 2)), \
        "Pallas Reorg mismatch vs reference (row-slab fallback)"

    print("KERNEL_OK")
</pallas_src>

<mosaic_0001>
module attributes {stable_mosaic.version = 11 : i64} {
  func.func @_reorg_kernel(%arg0: i32, %arg1: i32, %arg2: memref<1x4x256xf32, #tpu.memory_space<vmem>>, %arg3: memref<1x16x64xf32, #tpu.memory_space<vmem>>) attributes {dimension_semantics = [#tpu.dimension_semantics<parallel>, #tpu.dimension_semantics<parallel>], iteration_bounds = array<i64: 2, 1>, scalar_prefetch = 0 : i64, scratch_operands = 0 : i64, tpu.core_type = #tpu.core_type<tc>, window_params = [{transform_indices = @transform_0, window_bounds = array<i64: 1, 4, 256>}, {transform_indices = @transform_1, window_bounds = array<i64: 1, 16, 64>}]} {
    %c0 = arith.constant 0 : index
    %c0_0 = arith.constant 0 : index
    %c0_1 = arith.constant 0 : index
    %0 = vector.load %arg2[%c0, %c0_0, %c0_1] : memref<1x4x256xf32, #tpu.memory_space<vmem>>, vector<1x4x256xf32>
    %1 = vector.shape_cast %0 : vector<1x4x256xf32> to vector<4x256xf32>
    %2 = vector.shape_cast %1 : vector<4x256xf32> to vector<4x8x2x8x2xf32>
    %3 = tpu.transpose %2, [2, 4, 0, 1, 3] : vector<4x8x2x8x2xf32> -> vector<2x2x4x8x8xf32>
    %4 = vector.shape_cast %3 : vector<2x2x4x8x8xf32> to vector<16x64xf32>
    %c0_2 = arith.constant 0 : index
    %c0_3 = arith.constant 0 : index
    %c0_4 = arith.constant 0 : index
    %5 = vector.load %arg3[%c0_2, %c0_3, %c0_4] : memref<1x16x64xf32, #tpu.memory_space<vmem>>, vector<1x16x64xf32>
    %6 = vector.shape_cast %5 : vector<1x16x64xf32> to vector<16x64xf32>
    %7 = vector.shape_cast %4 : vector<16x64xf32> to vector<1x16x64xf32>
    tpu.vector_store %arg3[%c0_2, %c0_3, %c0_4], %7 {strides = array<i32>} : memref<1x16x64xf32, #tpu.memory_space<vmem>>, vector<1x16x64xf32>,
    return
  }
  func.func @transform_0(%arg0: i32, %arg1: i32) -> (i32, i32, i32) {
    %c0_i32 = arith.constant 0 : i32
    %c0_i32_0 = arith.constant 0 : i32
    return %arg0, %c0_i32, %arg1 : i32, i32, i32
  }
  func.func @transform_1(%arg0: i32, %arg1: i32) -> (i32, i32, i32) {
    %c0_i32 = arith.constant 0 : i32
    %c0_i32_0 = arith.constant 0 : i32
    return %arg0, %c0_i32, %arg1 : i32, i32, i32
  }
}

module attributes {stable_mosaic.version = 11 : i64} {
  func.func @_reorg_kernel(%arg0: i32, %arg1: i32, %arg2: memref<1x4x1x16x16xf32, #tpu.memory_space<vmem>>, %arg3: memref<1x16x1x8x8xf32, #tpu.memory_space<vmem>>) attributes {dimension_semantics = [#tpu.dimension_semantics<parallel>, #tpu.dimension_semantics<parallel>], iteration_bounds = array<i64: 2, 1>, scalar_prefetch = 0 : i64, scratch_operands = 0 : i64, tpu.core_type = #tpu.core_type<tc>, window_params = [{transform_indices = @transform_0, window_bounds = array<i64: 1, 4, 1, 16, 16>}, {transform_indices = @transform_1, window_bounds = array<i64: 1, 16, 1, 8, 8>}]} {
    %c0 = arith.constant 0 : index
    %c0_0 = arith.constant 0 : index
    %c0_1 = arith.constant 0 : index
    %c0_2 = arith.constant 0 : index
    %c0_3 = arith.constant 0 : index
    %0 = vector.load %arg2[%c0, %c0_0, %c0_1, %c0_2, %c0_3] : memref<1x4x1x16x16xf32, #tpu.memory_space<vmem>>, vector<1x4x1x16x16xf32>
    %1 = vector.shape_cast %0 : vector<1x4x1x16x16xf32> to vector<4x16x16xf32>
    %2 = vector.shape_cast %1 : vector<4x16x16xf32> to vector<4x8x2x8x2xf32>
    %3 = tpu.transpose %2, [2, 4, 0, 1, 3] : vector<4x8x2x8x2xf32> -> vector<2x2x4x8x8xf32>
    %4 = vector.shape_cast %3 : vector<2x2x4x8x8xf32> to vector<16x8x8xf32>
    %c0_4 = arith.constant 0 : index
    %c0_5 = arith.constant 0 : index
    %c0_6 = arith.constant 0 : index
    %c0_7 = arith.constant 0 : index
    %c0_8 = arith.constant 0 : index
    %5 = vector.load %arg3[%c0_4, %c0_5, %c0_6, %c0_7, %c0_8] : memref<1x16x1x8x8xf32, #tpu.memory_space<vmem>>, vector<1x16x1x8x8xf32>
    %6 = vector.shape_cast %5 : vector<1x16x1x8x8xf32> to vector<16x8x8xf32>
    %7 = vector.shape_cast %4 : vector<16x8x8xf32> to vector<1x16x1x8x8xf32>
    tpu.vector_store %arg3[%c0_4, %c0_5, %c0_6, %c0_7, %c0_8], %7 {strides = array<i32>} : memref<1x16x1x8x8xf32, #tpu.memory_space<vmem>>, vector<1x16x1x8x8xf32>,
    return
  }
  func.func @transform_0(%arg0: i32, %arg1: i32) -> (i32, i32, i32, i32, i32) {
    %c0_i32 = arith.constant 0 : i32
    %c0_i32_0 = arith.constant 0 : i32
    %c0_i32_1 = arith.constant 0 : i32
    %c0_i32_2 = arith.constant 0 : i32
    return %arg0, %c0_i32, %arg1, %c0_i32_0, %c0_i32_1 : i32, i32, i32, i32, i32
  }
  func.func @transform_1(%arg0: i32, %arg1: i32) -> (i32, i32, i32, i32, i32) {
    %c0_i32 = arith.constant 0 : i32
    %c0_i32_0 = arith.constant 0 : i32
    %c0_i32_1 = arith.constant 0 : i32
    %c0_i32_2 = arith.constant 0 : i32
    return %arg0, %c0_i32, %arg1, %c0_i32_0, %c0_i32_1 : i32, i32, i32, i32, i32
  }
}

</mosaic_0001>

<bundles_post_ra>
// kernel: tpu_custom_call.1
= control target key start
LH: loop header
LB: loop body
LE: loop exit
PB: predicated region body
PF: predicated region fallthrough
CT: control target
= control target key end

     0   :  { %6 = vsyncpa [#allocation3], 0  ;;  %s5195_s0 = inlined_call_operand.hbm [shape: f32[2,4,1,16,16], index: 0, kind: input, shape index: {}]   ;;  %s5196_s1 = inlined_call_operand.vmem [shape: f32[2,16,1,8,8], index: 1, kind: output, shape index: {}]  }
   0x1   :  { %8 = vsyncpa [#allocation3 + $0x1], 0  ;;  %s4176_s6 = smov 0   ;;  %s4178_s7 = smov 0  }
   0x2   :  { %s4180_s8 = smov 0   ;;  %s4182_s9 = smov 0  }
   0x3   :  { %s4184_s10 = smov 0   ;;  %s4186_s11 = smov 0  }
   0x4 LB: > { %s3990_s12 = sadd.s32 4294967295, %s4152_s11   ;;  %s26_s13 = sadd.s32 1, %s4148_s10  ;;  %s4152_s11 = sphi %s4186_s11, %s14_s11   ;;  %s4148_s10 = sphi %s4184_s10, %s5302_s10   ;;  %s4144_s9 = sphi %s4182_s9, %s5301_s9   ;;  %s4140_s8 = sphi %s4180_s8, %s5300_s8   ;;  %s4136_s7 = sphi %s4178_s7, %s5299_s7   ;;  %s4132_s6 = sphi %s4176_s6, %s5298_s6  }
   0x5   : > { %p28_p0 = scmp.ge.s32.totalorder %s26_s13, 2  ;;  %s35_s14 = sadd.s32 1, %s4140_s8 }
   0x6   : > { %p42_p1 = scmp.ne.s32.totalorder %s4140_s8, %s4136_s7  ;;  %p43_p2 = scmp.eq.s32.totalorder %s4152_s11, 0 }
   0x7   : > { %s5304_s13 = smov (%p28_p0, %s26_s13), 0  ;;  %p48_p4 = scmp.ne.s32.totalorder %s4136_s7, %s4132_s6 }
   0x8   : > { %p4212_p3 = por %p43_p2, %p42_p1  ;;  %s30_s16 = ssub.s32 %s4148_s10, %s5304_s13 }
   0x9   : > { %p49_p5 = scmp.eq.s32.totalorder %s3990_s12, 0  ;;  %p33_p6 = scmp.eq.s32.totalorder %s30_s16, 0 }
   0xa   : > { %p4011_p8 = scmp.lt.s32.totalorder %s4152_s11, 2  ;;  %s100_s19 = sand.u32 1, %s4140_s8  }
   0xb   : > { %p4219_p7 = por %p49_p5, %p48_p4  ;;  %s4003_s20 = sshll.u32 %s4148_s10, 10 }
   0xc   : > { %s4225_s18 = scalar_select %p33_p6, %s4140_s8, %s35_s14  }
   0xd   : > { %s3994_s21 = sshll.u32 %s100_s19, 6  ;;  %s4232_s24 = scalar_lea.hbm %s5195_s0, %s4003_s20 }
   0xe   : > { %s104_s25 = scalar_lea.vmem [#allocation2], %s3994_s21  ;;  %p4236_p9 = pnand %p4011_p8, %p4212_p3 }
   0xf   : > { %s113_s26 = sshll.u32 %s104_s25, 4  ;;  %s4242_s28 = scalar_lea.sflag [#allocation3], %s100_s19  ;;  %s4240_s26 = int_to_ptr.vmem [resolvable:$true] %s113_s26 }
  0x10   : > { %s4072_s29 = scalar_lea.hbm %s4232_s24, 1024  ;;  %p4074_p11 = pneg %p4236_p9 }
  0x11   : > { %p4073_p10 = scmp.ne.s32.totalorder %s4232_s24, %s4072_s29  ;;  %s4077_s3 = scalar_lea.hbm %s5195_s0, 2048 }
  0x12   : > { %p4078_p0 = scmp.lt.u32.totalorder %s4232_s24, %s5195_s0  ;;  %p4079_p1 = scmp.lt.u32.totalorder %s4077_s3, %s4072_s29 }
  0x13   : > { %p4075_p12 = pnand %p4074_p11, %p4073_p10  ;;  %p4081_p3 = scmp.lt.u32.totalorder %s4072_s29, %s4232_s24 }
  0x14   : > { %p4080_p2 = por %p4079_p1, %p4078_p0 }
  0x15   : > { %p4076_p13 = pneg %p4075_p12 }
  0x16   : > { %p4082_p4 = por %p4081_p3, %p4080_p2 }
  0x18   : > { %p4083_p5 = pnand %p4082_p4, %p4076_p13 }
  0x1a   : > { %4086 = shalt.err (!%p4083_p5)
}
  0x1b   : > { %s4087_s6 = scalar_lea.vmem %s4240_s26, 1024  ;;  %s4154_s12 = smov [#allocation2]  }
  0x1c   : > { %p4088_p6 = scmp.ne.s32.totalorder %s4240_s26, %s4087_s6  ;;  %s4092_s14 = sshll.u32 %s4154_s12, 4  ;;  %s4093_s14 = int_to_ptr.vmem [resolvable:$false] %s4092_s14 }
  0x1d   : > { %s4094_s15 = scalar_lea.vmem %s4093_s14, 2048  ;;  %p4095_p12 = scmp.lt.s32.totalorder %s4240_s26, %s4093_s14 }
  0x1e   : > { %p4090_p8 = pnand %p4088_p6, %p4074_p11  ;;  %p4096_p0 = scmp.lt.s32.totalorder %s4094_s15, %s4087_s6 }
  0x20   : > { %p4091_p10 = pneg %p4090_p8  ;;  %p4097_p1 = por %p4096_p0, %p4095_p12 }
  0x22   : > { %p4098_p2 = pnand %p4097_p1, %p4091_p10 }
  0x24   : > { %4101 = shalt.err (!%p4098_p2)
}
  0x25   : > { %s4155_s16 = smov 128   ;;  %s4156_s19 = smov 8  }
  0x26   : > { %4010 = dma.hbm_to_vmem [thread:$0]  (!%p4236_p9), %s4232_s24, 1024, %s4240_s26, %s4242_s28, %s4155_s16, %s4155_s16, %s4156_s19  }
  0x27   : > { %p3997_p11 = scmp.ge.s32.totalorder %s4152_s11, 1  ;;  %p121_p13 = scmp.lt.s32.totalorder %s4152_s11, 3 }
  0x29   : > { %p122_p3 = pnand %p3997_p11, %p121_p13 }
  0x2b   : > { %125 = sbr.rel (%p122_p3) target bundleno = 545 (0x221), region = 24 }
  0x32   : > { %s127_s20 = sand.u32 1, %s4136_s7  }
  0x33   : > { %s3998_s21 = sshll.u32 %s127_s20, 6  ;;  %s128_s22 = scalar_lea.sflag [#allocation3], %s127_s20 }
  0x34   : > { %s131_s23 = scalar_lea.vmem [#allocation2], %s3998_s21 }
  0x35   : > { %4127 = dma.done.wait (%p4219_p7), %s128_s22, 1024  }
  0x36   : > { %4129 = vsyncadd (%p4219_p7), %s128_s22, 4294966272  ;;  %v4277_v0 = vld [vmem:[%s131_s23 + $0x10] sm:$0xff]  ;;  %v4279_v1 = vld [vmem:[%s131_s23] sm:$0xff]  ;;  %s4157_s24 = smov 126   ;;  %s4158_s17 = smov 124   ;;  %v350_v46 = vlaneseq  ;;  %vm3881_vm0 = vcmask 64512  }
  0x37   : > { %181 = vrot.lane.b32.xlu1 %v4277_v0, %s4157_s24  ;;  %177 = vrot.lane.b32.xlu0 %v4279_v1, %s4157_s24  ;;  %v4283_v2 = vld [vmem:[%s131_s23 + $0x18] sm:$0xff]  ;;  %v4285_v3 = vld [vmem:[%s131_s23 + $0x8] sm:$0xff]  ;;  %s4159_s25 = smov 122   ;;  %s4160_s26 = smov 120   ;;  %v4164_v44 = vmov 1983009808  }
  0x38   : > { %5225 = vst [vmem:[#allocation5_spill] sm:$0xff] %v4283_v2  ;;  %v4289_v4 = vld [vmem:[%s131_s23 + $0x28] sm:$0xff]  ;;  %v4291_v5 = vld [vmem:[%s131_s23 + $0x20] sm:$0xff]  ;;  %v4295_v6 = vld [vmem:[%s131_s23 + $0x38] sm:$0xff]  ;;  %s4161_s27 = smov 118   ;;  %s4162_s28 = smov 116   ;;  %v348_v45 = vunpack.c.l.s4 %v4164_v44 }
  0x39   : > { %5226 = vst [vmem:[#allocation6_spill] sm:$0xff] %v4291_v5  ;;  %v4297_v7 = vld [vmem:[%s131_s23 + $0x30] sm:$0xff]  ;;  %s4163_s29 = smov 114   ;;  %v351_v50 = vshrl.u32 %v350_v46, 7  ;;  %v4165_v53 = vmov 1934713408  }
  0x3a   : > { %5227 = vst [vmem:[#allocation7_spill] sm:$0xff] %v4297_v7  ;;  %v349_v49 = vunpack.c.0.s8 %v348_v45  ;;  %v412_v54 = vunpack.c.l.s4 %v4165_v53  ;;  %p153_p7 = scmp.lt.s32.totalorder %s4144_s9, 1 }
  0x3b   : > { %183 = vrot.lane.b32.xlu1 %v4283_v2, %s4157_s24  ;;  %179 = vrot.lane.b32.xlu0 %v4285_v3, %s4157_s24 }
  0x3c   : > { %v4427_v55 = vsub.s32 %v349_v49, %v351_v50  ;;  %v413_v58 = vunpack.c.0.s8 %v412_v54  ;;  %s5306_s9 = smov (!%p153_p7, %s4144_s9), 1 }
  0x3d   : > { %s4004_s30 = sshll.u32 %s5306_s9, 7 }
  0x3e   : > { %s5102_s4 = scalar_lea.vmem %s5196_s1, %s4004_s30 }
  0x3f   : > { %187 = vrot.lane.b32.xlu1 %v4289_v4, %s4157_s24  ;;  %185 = vrot.lane.b32.xlu0 %v4291_v5, %s4157_s24 }
  0x43   : > { %191 = vrot.lane.b32.xlu1 %v4295_v6, %s4157_s24  ;;  %189 = vrot.lane.b32.xlu0 %v4297_v7, %s4157_s24 }
  0x47   : > { %203 = vrot.lane.b32.xlu1 %v4285_v3, %s4158_s17  ;;  %201 = vrot.lane.b32.xlu0 %v4279_v1, %s4158_s17 }
  0x4b   : > { %207 = vrot.lane.b32.xlu1 %v4283_v2, %s4158_s17  ;;  %205 = vrot.lane.b32.xlu0 %v4277_v0, %s4158_s17 }
  0x4f   : > { %211 = vrot.lane.b32.xlu1 %v4289_v4, %s4158_s17  ;;  %209 = vrot.lane.b32.xlu0 %v4291_v5, %s4158_s17 }
  0x53   : > { %215 = vrot.lane.b32.xlu1 %v4295_v6, %s4158_s17  ;;  %213 = vrot.lane.b32.xlu0 %v4297_v7, %s4158_s17 }
  0x57   : > { %227 = vrot.lane.b32.xlu1 %v4285_v3, %s4159_s25  ;;  %225 = vrot.lane.b32.xlu0 %v4279_v1, %s4159_s25 }
  0x5b   : > { %231 = vrot.lane.b32.xlu1 %v4283_v2, %s4159_s25  ;;  %229 = vrot.lane.b32.xlu0 %v4277_v0, %s4159_s25 }
  0x5f   : > { %235 = vrot.lane.b32.xlu1 %v4289_v4, %s4159_s25  ;;  %233 = vrot.lane.b32.xlu0 %v4291_v5, %s4159_s25 }
  0x63   : > { %239 = vrot.lane.b32.xlu1 %v4295_v6, %s4159_s25  ;;  %237 = vrot.lane.b32.xlu0 %v4297_v7, %s4159_s25 }
  0x67   : > { %251 = vrot.lane.b32.xlu1 %v4285_v3, %s4160_s26  ;;  %249 = vrot.lane.b32.xlu0 %v4279_v1, %s4160_s26 }
  0x6b   : > { %255 = vrot.lane.b32.xlu1 %v4283_v2, %s4160_s26  ;;  %253 = vrot.lane.b32.xlu0 %v4277_v0, %s4160_s26 }
  0x6f   : > { %259 = vrot.lane.b32.xlu1 %v4289_v4, %s4160_s26  ;;  %257 = vrot.lane.b32.xlu0 %v4291_v5, %s4160_s26 }
  0x73   : > { %263 = vrot.lane.b32.xlu1 %v4295_v6, %s4160_s26  ;;  %261 = vrot.lane.b32.xlu0 %v4297_v7, %s4160_s26 }
  0x77   : > { %275 = vrot.lane.b32.xlu1 %v4285_v3, %s4161_s27  ;;  %273 = vrot.lane.b32.xlu0 %v4279_v1, %s4161_s27 }
  0x7b   : > { %279 = vrot.lane.b32.xlu1 %v4283_v2, %s4161_s27  ;;  %277 = vrot.lane.b32.xlu0 %v4277_v0, %s4161_s27 }
  0x7f   : > { %283 = vrot.lane.b32.xlu1 %v4289_v4, %s4161_s27  ;;  %281 = vrot.lane.b32.xlu0 %v4291_v5, %s4161_s27 }
  0x83   : > { %287 = vrot.lane.b32.xlu1 %v4295_v6, %s4161_s27  ;;  %285 = vrot.lane.b32.xlu0 %v4297_v7, %s4161_s27 }
  0x87   : > { %299 = vrot.lane.b32.xlu1 %v4285_v3, %s4162_s28  ;;  %297 = vrot.lane.b32.xlu0 %v4279_v1, %s4162_s28 }
  0x8b   : > { %303 = vrot.lane.b32.xlu1 %v4283_v2, %s4162_s28  ;;  %301 = vrot.lane.b32.xlu0 %v4277_v0, %s4162_s28 }
  0x8f   : > { %307 = vrot.lane.b32.xlu1 %v4289_v4, %s4162_s28  ;;  %305 = vrot.lane.b32.xlu0 %v4291_v5, %s4162_s28 }
  0x93   : > { %311 = vrot.lane.b32.xlu1 %v4295_v6, %s4162_s28  ;;  %309 = vrot.lane.b32.xlu0 %v4297_v7, %s4162_s28 }
  0x97   : > { %323 = vrot.lane.b32.xlu1 %v4285_v3, %s4163_s29  ;;  %321 = vrot.lane.b32.xlu0 %v4279_v1, %s4163_s29 }
  0x9b   : > { %327 = vrot.lane.b32.xlu1 %v4283_v2, %s4163_s29  ;;  %325 = vrot.lane.b32.xlu0 %v4277_v0, %s4163_s29 }
  0x9f   : > { %331 = vrot.lane.b32.xlu1 %v4289_v4, %s4163_s29  ;;  %329 = vrot.lane.b32.xlu0 %v4291_v5, %s4163_s29 }
  0xa3   : > { %335 = vrot.lane.b32.xlu1 %v4295_v6, %s4163_s29  ;;  %333 = vrot.lane.b32.xlu0 %v4297_v7, %s4163_s29 }
  0xa9   : > { %v4349_v8 = vpop.permute.xlu1 %181  ;;  %v4351_v9 = vpop.permute.xlu0 %177 }
  0xad   : > { %v4353_v10 = vpop.permute.xlu1 %183  ;;  %v4355_v11 = vpop.permute.xlu0 %179 }
  0xae   : > { %5228 = vst [vmem:[#allocation8_spill] sm:$0xff] %v4353_v10 }
  0xb1   : > { %v4357_v12 = vpop.permute.xlu1 %187  ;;  %v4359_v13 = vpop.permute.xlu0 %185 }
  0xb2   : > { %5229 = vst [vmem:[#allocation9_spill] sm:$0xff] %v4359_v13 }
  0xb5   : > { %v4361_v14 = vpop.permute.xlu1 %191  ;;  %v4363_v15 = vpop.permute.xlu0 %189 }
  0xb6   : > { %5230 = vst [vmem:[#allocation10_spill] sm:$0xff] %v4363_v15 }
  0xb9   : > { %v204_v16 = vpop.permute.xlu1 %203  ;;  %v4365_v17 = vpop.permute.xlu0 %201 }
  0xba   : > { %v481_v59 = vcombine.low %v4285_v3, %v204_v16  ;;  %v482_v60 = vcombine.high %v4285_v3, %v204_v16  ;;  %v345_v61 = vcombine.low %v4279_v1, %v4365_v17  ;;  %v346_v62 = vcombine.high %v4279_v1, %v4365_v17 }
  0xbc   : > { %v496_v54 = vrot.slane %v482_v60, %v4427_v55 }
  0xbd   : > { %v4367_v18 = vpop.permute.xlu1 %207  ;;  %v4369_v19 = vpop.permute.xlu0 %205 }
  0xbe   : > { %5231 = vst [vmem:[#allocation11_spill] sm:$0xff] %v4367_v18  ;;  %v753_v63 = vcombine.low %v4283_v2, %v4367_v18  ;;  %v617_v44 = vcombine.low %v4277_v0, %v4369_v19  ;;  %v618_v45 = vcombine.high %v4277_v0, %v4369_v19 }
  0xc0   : > { %v4470_v7 = vrot.slane %v753_v63, %v4427_v55 }
  0xc1   : > { %v4371_v20 = vpop.permute.xlu1 %211  ;;  %v4373_v21 = vpop.permute.xlu0 %209 }
  0xc2   : > { %5232 = vst [vmem:[#allocation12_spill] sm:$0xff] %v4373_v21  ;;  %v1025_v46 = vcombine.low %v4289_v4, %v4371_v20  ;;  %v1026_v3 = vcombine.high %v4289_v4, %v4371_v20  ;;  %v4463_v4 = vsub.s32 %v413_v58, %v351_v50  ;;  %v489_v20 = vrot.slane %v481_v59, %v4427_v55 }
  0xc3   : > { %5238 = vst [vmem:[#allocation18_spill] sm:$0xff] %v4470_v7 }
  0xc4   : > { %v4481_v58 = vrot.slane %v1025_v46, %v4427_v55  ;;  %v4484_v59 = vrot.slane %v1026_v3, %v4427_v55 }
  0xc5   : > { %v4375_v22 = vpop.permute.xlu1 %215  ;;  %v4377_v23 = vpop.permute.xlu0 %213 }
  0xc6   : > { %5233 = vst [vmem:[#allocation13_spill] sm:$0xff] %v4377_v23  ;;  %v1297_v17 = vcombine.low %v4295_v6, %v4375_v22  ;;  %v1298_v49 = vcombine.high %v4295_v6, %v4375_v22  ;;  %v4473_v6 = vrot.slane %v617_v44, %v4427_v55  ;;  %v4476_v22 = vrot.slane %v618_v45, %v4427_v55 }
  0xc7   : > { %5239 = vst [vmem:[#allocation19_spill] sm:$0xff] %v4484_v59 }
  0xc8   : > { %v4492_v63 = vrot.slane %v1298_v49, %v4427_v55 }
  0xc9   : > { %v4379_v24 = vpop.permute.xlu1 %227  ;;  %v4381_v25 = vpop.permute.xlu0 %225 }
  0xca   : > { %v361_v16 = vcombine.low %v4351_v9, %v4381_v25  ;;  %v362_v1 = vcombine.high %v4351_v9, %v4381_v25  ;;  %v497_v0 = vcombine.low %v4355_v11, %v4379_v24  ;;  %v353_v9 = vrot.slane %v345_v61, %v4427_v55 }
  0xcb   : > { %v360_v25 = vrot.slane %v346_v62, %v4427_v55  ;;  %v498_v50 = vcombine.high %v4355_v11, %v4379_v24  ;;  %v4489_v62 = vrot.slane %v1297_v17, %v4427_v55 }
  0xcc   : > { %v369_v60 = vrot.slane %v361_v16, %v4427_v55  ;;  %v376_v61 = vrot.slane %v362_v1, %v4427_v55  ;;  %v505_v44 = vrot.slane %v497_v0, %v4427_v55 }
  0xcd   : > { %v4383_v26 = vpop.permute.xlu1 %231  ;;  %v4385_v27 = vpop.permute.xlu0 %229  ;;  %v512_v17 = vrot.slane %v498_v50, %v4427_v55 }
  0xce   : > { %5234 = vst [vmem:[#allocation14_spill] sm:$0xff] %v4383_v26  ;;  %v769_v11 = vcombine.low %v4353_v10, %v4383_v26  ;;  %v633_v49 = vcombine.low %v4349_v8, %v4385_v27  ;;  %v634_v0 = vcombine.high %v4349_v8, %v4385_v27  ;;  %v409_v23 = vcombine.low %v353_v9, %v369_v60 }
  0xcf   : > { %v425_v15 = vcombine.low %v360_v25, %v376_v61  ;;  %v410_v3 = vcombine.high %v353_v9, %v369_v60  ;;  %v545_v21 = vcombine.low %v489_v20, %v505_v44  ;;  %v546_v13 = vcombine.high %v489_v20, %v505_v44 }
  0xd0   : > { %v4517_v16 = vrot.slane %v769_v11, %v4427_v55  ;;  %v562_v60 = vcombine.high %v496_v54, %v512_v17  ;;  %v4536_v20 = vrot.slane %v634_v0, %v4427_v55 }
  0xd1   : > { %v4387_v28 = vpop.permute.xlu1 %235  ;;  %v4389_v29 = vpop.permute.xlu0 %233  ;;  %v4543_v44 = vrot.slane %v410_v3, %v4463_v4  ;;  %v4558_v3 = vrot.slane %v545_v21, %v4463_v4 }
  0xd2   : > { %5235 = vst [vmem:[#allocation15_spill] sm:$0xff] %v4389_v29  ;;  %v1042_v46 = vcombine.high %v4357_v12, %v4387_v28  ;;  %5240 = vst [vmem:[#allocation20_spill] sm:$0xff] %v4517_v16  ;;  %v1041_v1 = vcombine.low %v4357_v12, %v4387_v28  ;;  %v561_v28 = vcombine.low %v496_v54, %v512_v17 }
  0xd4   : > { %v4533_v12 = vrot.slane %v1042_v46, %v4427_v55 }
  0xd5   : > { %v4391_v30 = vpop.permute.xlu1 %239  ;;  %v4393_v31 = vpop.permute.xlu0 %237 }
  0xd6   : > { %5236 = vst [vmem:[#allocation16_spill] sm:$0xff] %v4393_v31  ;;  %v426_v31 = vcombine.high %v360_v25, %v376_v61  ;;  %v4530_v25 = vrot.slane %v633_v49, %v4427_v55  ;;  %5241 = vst [vmem:[#allocation21_spill] sm:$0xff] %v4533_v12  ;;  %v417_v61 = vrot.slane %v409_v23, %v4463_v4 }
  0xd8   : > { %v4553_v17 = vrot.slane %v426_v31, %v4463_v4  ;;  %v4571_v31 = vrot.slane %v562_v60, %v4463_v4 }
  0xd9   : > { %v4395_v32 = vpop.permute.xlu1 %251  ;;  %v4397_v33 = vpop.permute.xlu0 %249 }
  0xda   : > { %5242 = vst [vmem:[#allocation22_spill] sm:$0xff] %v4571_v31 }
  0xdd   : > { %v4399_v34 = vpop.permute.xlu1 %255  ;;  %v4401_v35 = vpop.permute.xlu0 %253 }
  0xe1   : > { %v4403_v36 = vpop.permute.xlu1 %259  ;;  %v4405_v37 = vpop.permute.xlu0 %257 }
  0xe5   : > { %v4407_v38 = vpop.permute.xlu1 %263  ;;  %v4409_v39 = vpop.permute.xlu0 %261 }
  0xe9   : > { %v4411_v40 = vpop.permute.xlu1 %275  ;;  %v4413_v41 = vpop.permute.xlu0 %273 }
  0xed   : > { %v4415_v42 = vpop.permute.xlu1 %279  ;;  %v4417_v43 = vpop.permute.xlu0 %277 }
  0xee   : > { %5237 = vst [vmem:[#allocation17_spill] sm:$0xff] %v4415_v42 }
  0xf1   : > { %v4419_v47 = vpop.permute.xlu1 %283  ;;  %v4421_v48 = vpop.permute.xlu0 %281 }
  0xf5   : > { %v4423_v51 = vpop.permute.xlu1 %287  ;;  %v4425_v52 = vpop.permute.xlu0 %285 }
  0xf9   : > { %v4429_v56 = vpop.permute.xlu1 %299  ;;  %v4431_v57 = vpop.permute.xlu0 %297 }
  0xfa   : > { %v378_v54 = vcombine.high %v4397_v33, %v4431_v57 }
  0xfd   : > { %v4459_v19 = vpop.permute.xlu1 %303  ;;  %v4461_v53 = vpop.permute.xlu0 %301 }
  0xfe   : > { %v650_v21 = vcombine.high %v4401_v35, %v4461_v53 }
 0x100   : > { %v4600_v2 = vrot.slane %v650_v21, %v4427_v55 }
 0x101   : > { %v4497_v24 = vpop.permute.xlu1 %307  ;;  %v4499_v45 = vpop.permute.xlu0 %305 }
 0x105   : > { %v312_v50 = vpop.permute.xlu1 %311  ;;  %v4521_v5 = vpop.permute.xlu0 %309 }
 0x106   : > { %v1329_v8 = vcombine.low %v4407_v38, %v312_v50  ;;  %v1330_v27 = vcombine.high %v4407_v38, %v312_v50  ;;  %v1193_v29 = vcombine.low %v4409_v39, %v4521_v5  ;;  %v1194_v9 = vcombine.high %v4409_v39, %v4521_v5 }
 0x107   : > { %v4540_v38 = vrot.slane %v425_v15, %v4463_v4  ;;  %v4546_v5 = vrot.slane %v1041_v1, %v4427_v55  ;;  %v377_v39 = vcombine.low %v4397_v33, %v4431_v57  ;;  %v4561_v1 = vrot.slane %v546_v13, %v4463_v4 }
 0x108   : > { %v4568_v57 = vrot.slane %v561_v28, %v4463_v4  ;;  %v392_v28 = vrot.slane %v378_v54, %v4427_v55 }
 0x109   : > { %v324_v11 = vpop.permute.xlu1 %323  ;;  %v322_v46 = vpop.permute.xlu0 %321 }
 0x10a   : > { %v393_v15 = vcombine.low %v4413_v41, %v322_v46  ;;  %v394_v23 = vcombine.high %v4413_v41, %v322_v46  ;;  %v513_v41 = vcombine.low %v4395_v32, %v4429_v56  ;;  %v385_v46 = vrot.slane %v377_v39, %v4427_v55 }
 0x10b   : > { %v529_v60 = vcombine.low %v4411_v40, %v324_v11 }
 0x10c   : > { %v401_v13 = vrot.slane %v393_v15, %v4427_v55  ;;  %v408_v0 = vrot.slane %v394_v23, %v4427_v55  ;;  %v4597_v26 = vrot.slane %v513_v41, %v4427_v55  ;;  %v5244_v15 = vcombine.high %v4403_v36, %v4497_v24 }
 0x10d   : > { %v4584_v33 = vpop.permute.xlu1 %327  ;;  %v4586_v49 = vpop.permute.xlu0 %325  ;;  %v530_v23 = vcombine.high %v4411_v40, %v324_v11  ;;  %v4610_v39 = vrot.slane %v529_v60, %v4427_v55  ;;  %v4626_v40 = vrot.slane %v1330_v27, %v4427_v55  ;;  %v4629_v11 = vrot.slane %v1193_v29, %v4427_v55 }
 0x10e   : > { %5243 = vst [vmem:[#allocation23_spill] sm:$0xff] %v4584_v33  ;;  %v441_v50 = vcombine.low %v385_v46, %v401_v13  ;;  %v457_v54 = vcombine.low %v392_v28, %v408_v0  ;;  %v442_v16 = vcombine.high %v385_v46, %v401_v13  ;;  %v458_v10 = vcombine.high %v392_v28, %v408_v0 }
 0x10f   : > { %v4606_v7 = vrot.slane %v5244_v15, %v4427_v55  ;;  %v666_v13 = vcombine.high %v4417_v43, %v4586_v49  ;;  %v4623_v28 = vrot.slane %v1329_v8, %v4427_v55  ;;  %v4641_v8 = vrot.slane %v530_v23, %v4427_v55 }
 0x110   : > { %v449_v21 = vrot.slane %v441_v50, %v4463_v4  ;;  %v4620_v46 = vrot.slane %v457_v54, %v4463_v4  ;;  %v456_v31 = vrot.slane %v442_v16, %v4463_v4  ;;  %v4635_v50 = vrot.slane %v458_v10, %v4463_v4 }
 0x111   : > { %v4614_v0 = vpop.permute.xlu1 %331  ;;  %v4616_v41 = vpop.permute.xlu0 %329  ;;  %v4638_v54 = vrot.slane %v1194_v9, %v4427_v55  ;;  %v802_v29 = vcombine.high %v4415_v42, %v4584_v33  ;;  %v4649_v12 = vrot.slane %v666_v13, %v4427_v55 }
 0x112   : > { %v1074_v60 = vcombine.high %v4419_v47, %v4614_v0  ;;  %v474_v15 = vcombine.high %v417_v61, %v449_v21  ;;  %v473_v18 = vcombine.low %v417_v61, %v449_v21  ;;  %v478_v9 = vcombine.high %v4540_v38, %v4620_v46 }
 0x113   : > { %v577_v61 = vcombine.low %v4597_v26, %v4610_v39  ;;  %v475_v42 = vcombine.low %v4543_v44, %v456_v31  ;;  %v480_v33 = vcombine.high %v4553_v17, %v4635_v50  ;;  %v476_v21 = vcombine.high %v4543_v44, %v456_v31 }
 0x114   : > { %v4646_v27 = vrot.slane %v1074_v60, %v4427_v55  ;;  %1465 = vxpose.xlu1.b32.start.end [1/1] (short) (narrow) %v474_v15, 8  ;;  %1433 = vxpose.xlu0.b32.start.end [1/1] (short) (narrow) %v473_v18, 8 }
 0x115   : > { %v336_v16 = vpop.permute.xlu1 %335  ;;  %v334_v10 = vpop.permute.xlu0 %333 }
 0x116   : > { %5245 = vst [vmem:[#allocation24_spill] sm:$0xff] %v4646_v27  ;;  %v1345_v60 = vcombine.low %v4423_v51, %v336_v16  ;;  %v1346_v13 = vcombine.high %v4423_v51, %v336_v16  ;;  %v1209_v18 = vcombine.low %v4425_v52, %v334_v10  ;;  %v1210_v15 = vcombine.high %v4425_v52, %v334_v10 }
 0x117   : > { %v4674_v27 = vrot.slane %v577_v61, %v4463_v4  ;;  %v578_v16 = vcombine.high %v4597_v26, %v4610_v39  ;;  %v697_v26 = vcombine.low %v4476_v22, %v4536_v20  ;;  %v5248_v39 = vcombine.high %v4395_v32, %v4429_v56 }
 0x118   : > { %v4667_v59 = vrot.slane %v1345_v60, %v4427_v55  ;;  %v4670_v23 = vrot.slane %v1346_v13, %v4427_v55  ;;  %v4677_v51 = vrot.slane %v1209_v18, %v4427_v55  ;;  %v4680_v52 = vrot.slane %v1210_v15, %v4427_v55  ;;  %1593 = vxpose.xlu1.b32.start.end [1/1] (short) (narrow) %v478_v9, 8 }
 0x119   : > { %1497 = vxpose.xlu0.b32.start.end [1/1] (short) (narrow) %v475_v42, 8  ;;  %v5246_v9 = vcombine.low %v4361_v14, %v4391_v30  ;;  %v5247_v18 = vcombine.high %v4361_v14, %v4391_v30  ;;  %v937_v42 = vcombine.low %v4421_v48, %v4616_v41  ;;  %v528_v60 = vrot.slane %v5248_v39, %v4427_v55 }
 0x11a   : > { %v1393_v10 = vcombine.low %v4623_v28, %v4667_v59  ;;  %v1394_v44 = vcombine.high %v4623_v28, %v4667_v59  ;;  %v1409_v31 = vcombine.low %v4626_v40, %v4670_v23  ;;  %v729_v14 = vcombine.low %v4600_v2, %v4649_v12  ;;  %v5268_v28 = vld [vmem:[#allocation14_spill] sm:$0xff] }
 0x11b   : > { %v4704_v13 = vrot.slane %v5246_v9, %v4427_v55  ;;  %v4710_v15 = vrot.slane %v5247_v18, %v4427_v55  ;;  %v786_v9 = vcombine.high %v4399_v34, %v4459_v19  ;;  %v4725_v30 = vrot.slane %v802_v29, %v4427_v55 }
 0x11c   : > { %1657 = vxpose.xlu1.b32.start.end [1/1] (short) (narrow) %v480_v33, 8  ;;  %v665_v18 = vcombine.low %v4417_v43, %v4586_v49  ;;  %v477_v61 = vcombine.low %v4540_v38, %v4620_v46  ;;  %v610_v56 = vcombine.high %v4558_v3, %v4674_v27  ;;  %v592_v33 = vrot.slane %v578_v16, %v4463_v4 }
 0x11d   : > { %1529 = vxpose.xlu0.b32.start.end [1/1] (short) (narrow) %v476_v21, 8  ;;  %v593_v21 = vcombine.low %v528_v60, %v4641_v8  ;;  %v649_v39 = vcombine.low %v4401_v35, %v4461_v53  ;;  %v4742_v43 = vrot.slane %v937_v42, %v4427_v55  ;;  %v5249_v38 = vcombine.low %v4473_v6, %v4530_v25 }
 0x11e   : > { %v5250_v46 = vcombine.high %v4473_v6, %v4530_v25  ;;  %v4757_v32 = vrot.slane %v786_v9, %v4427_v55  ;;  %v5251_v35 = vcombine.low %v4405_v37, %v4499_v45  ;;  %v938_v42 = vcombine.high %v4421_v48, %v4616_v41 }
 0x11f   : > { %v4748_v49 = vrot.slane %v5249_v38, %v4463_v4  ;;  %v673_v38 = vrot.slane %v665_v18, %v4427_v55  ;;  %v1073_v6 = vcombine.low %v4419_v47, %v4614_v0  ;;  %v479_v25 = vcombine.low %v4553_v17, %v4635_v50 }
 0x120   : > { %v4754_v16 = vrot.slane %v5250_v46, %v4463_v4  ;;  %v4763_v53 = vrot.slane %v5251_v35, %v4427_v55  ;;  %1721 = vxpose.xlu1.b32.start.end [1/1] (short) (narrow) %v610_v56, 8  ;;  %v594_v9 = vcombine.high %v528_v60, %v4641_v8  ;;  %v612_v46 = vcombine.high %v4561_v1, %v592_v33 }
 0x121   : > { %1561 = vxpose.xlu0.b32.start.end [1/1] (short) (narrow) %v477_v61, 8  ;;  %v601_v35 = vrot.slane %v593_v21, %v4463_v4  ;;  %v865_v29 = vcombine.low %v4757_v32, %v4725_v30  ;;  %v866_v48 = vcombine.high %v4757_v32, %v4725_v30  ;;  %v1361_v41 = vcombine.low %v4489_v62, %v4704_v13 }
 0x122   : > { %v1362_v47 = vcombine.high %v4489_v62, %v4704_v13  ;;  %v657_v17 = vrot.slane %v649_v39, %v4427_v55  ;;  %v985_v0 = vcombine.low %v4763_v53, %v4742_v43  ;;  %v1377_v50 = vcombine.low %v4492_v63, %v4710_v15  ;;  %v5258_v62 = vld [vmem:[#allocation22_spill] sm:$0xff] }
 0x123   : > { %v1378_v8 = vcombine.high %v4492_v63, %v4710_v15  ;;  %v4791_v61 = vrot.slane %v938_v42, %v4427_v55  ;;  %v1081_v60 = vrot.slane %v1073_v6, %v4427_v55  ;;  %v1089_v13 = vcombine.low %v4481_v58, %v4546_v5 }
 0x124   : > { %1785 = vxpose.xlu1.b32.start.end [1/1] (short) (narrow) %v612_v46, 8  ;;  %v713_v18 = vcombine.low %v657_v17, %v673_v38  ;;  %v5252_v56 = vcombine.high %v4405_v37, %v4499_v45  ;;  %v614_v63 = vcombine.high %v4568_v57, %v601_v35  ;;  %v609_v15 = vcombine.low %v4558_v3, %v4674_v27  ;;  %v5254_v46 = vld [vmem:[#allocation19_spill] sm:$0xff]  ;;  %v5255_v37 = vld [vmem:[#allocation21_spill] sm:$0xff] }
 0x125   : > { %1625 = vxpose.xlu0.b32.start.end [1/1] (short) (narrow) %v479_v25, 8  ;;  %v608_v39 = vrot.slane %v594_v9, %v4463_v4  ;;  %v5253_v42 = vcombine.low %v4403_v36, %v4497_v24  ;;  %v1090_v25 = vcombine.high %v4481_v58, %v4546_v5  ;;  %v5256_v45 = vcombine.low %v5254_v46, %v5255_v37 }
 0x126   : > { %v4802_v21 = vrot.slane %v5252_v56, %v4427_v55  ;;  %v5257_v3 = vcombine.high %v5254_v46, %v5255_v37  ;;  %v714_v9 = vcombine.high %v657_v17, %v673_v38  ;;  %v721_v24 = vrot.slane %v713_v18, %v4463_v4  ;;  %v5259_v38 = vld [vmem:[#allocation24_spill] sm:$0xff] }
 0x127   : > { %v1065_v6 = vrot.slane %v5253_v42, %v4427_v55  ;;  %v4818_v56 = vrot.slane %v5256_v45, %v4463_v4  ;;  %v4832_v5 = vrot.slane %v1089_v13, %v4463_v4  ;;  %v616_v46 = vcombine.high %v5258_v62, %v608_v39 }
 0x128   : > { %v4824_v27 = vrot.slane %v5257_v3, %v4463_v4  ;;  %1849 = vxpose.xlu1.b32.start.end [1/1] (short) (narrow) %v614_v63, 8  ;;  %v1001_v36 = vcombine.low %v4802_v21, %v4791_v61  ;;  %v1002_v58 = vcombine.high %v4802_v21, %v4791_v61  ;;  %v611_v37 = vcombine.low %v4561_v1, %v592_v33  ;;  %v5263_v3 = vld [vmem:[#allocation17_spill] sm:$0xff]  ;;  %v5281_v61 = vld [vmem:[#allocation7_spill] sm:$0xff] }
 0x129   : > { %1689 = vxpose.xlu0.b32.start.end [1/1] (short) (narrow) %v609_v15, 8  ;;  %v1121_v42 = vcombine.low %v1065_v6, %v1081_v60  ;;  %v1122_v45 = vcombine.high %v1065_v6, %v1081_v60  ;;  %v5260_v17 = vcombine.low %v4606_v7, %v5259_v38  ;;  %v5261_v15 = vcombine.high %v4606_v7, %v5259_v38  ;;  %v5262_v6 = vld [vmem:[#allocation23_spill] sm:$0xff] }
 0x12a   : > { %v785_v13 = vcombine.low %v4399_v34, %v4459_v19  ;;  %v4854_v1 = vrot.slane %v1090_v25, %v4463_v4  ;;  %v613_v7 = vcombine.low %v4568_v57, %v601_v35  ;;  %v728_v38 = vrot.slane %v714_v9, %v4463_v4 }
 0x12b   : > { %v4840_v63 = vrot.slane %v5260_v17, %v4463_v4  ;;  %v4846_v18 = vrot.slane %v5261_v15, %v4463_v4  ;;  %v4851_v60 = vrot.slane %v1121_v42, %v4463_v4  ;;  %v4857_v33 = vrot.slane %v1122_v45, %v4463_v4 }
 0x12c   : > { %v801_v17 = vcombine.low %v5263_v3, %v5262_v6  ;;  %1913 = vxpose.xlu1.b32.start.end [1/1] (short) (narrow) %v616_v46, 8  ;;  %v746_v34 = vcombine.high %v4748_v49, %v721_v24  ;;  %v705_v9 = vrot.slane %v697_v26, %v4463_v4  ;;  %v4885_v15 = vrot.slane %v1361_v41, %v4463_v4 }
 0x12d   : > { %1753 = vxpose.xlu0.b32.start.end [1/1] (short) (narrow) %v611_v37, 8  ;;  %v1154_v19 = vcombine.high %v4832_v5, %v4851_v60  ;;  %v1156_v25 = vcombine.high %v4854_v1, %v4857_v33  ;;  %v1158_v42 = vcombine.high %v4818_v56, %v4840_v63  ;;  %v1153_v45 = vcombine.low %v4832_v5, %v4851_v60 }
 0x12e   : > { %v4888_v6 = vrot.slane %v1362_v47, %v4463_v4  ;;  %v793_v3 = vrot.slane %v785_v13, %v4427_v55  ;;  %v4892_v35 = vrot.slane %v1377_v50, %v4463_v4  ;;  %v4895_v57 = vrot.slane %v1378_v8, %v4463_v4 }
 0x12f   : > { %v809_v26 = vrot.slane %v801_v17, %v4427_v55  ;;  %v737_v41 = vrot.slane %v729_v14, %v4463_v4  ;;  %v4906_v47 = vrot.slane %v1393_v10, %v4463_v4  ;;  %v4912_v50 = vrot.slane %v1394_v44, %v4463_v4  ;;  %v5267_v44 = vld [vmem:[#allocation5_spill] sm:$0xff] }
 0x130   : > { %1977 = vxpose.xlu1.b32.start.end [1/1] (short) (narrow) %v746_v34, 8  ;;  %v615_v8 = vcombine.low %v5258_v62, %v608_v39  ;;  %v748_v13 = vcombine.high %v4754_v16, %v728_v38  ;;  %v4920_v14 = vrot.slane %v1409_v31, %v4463_v4  ;;  %v5264_v10 = vcombine.high %v4626_v40, %v4670_v23  ;;  %v5266_v62 = vld [vmem:[#allocation11_spill] sm:$0xff]  ;;  %v5269_v40 = vld [vmem:[#allocation8_spill] sm:$0xff] }
 0x131   : > { %1817 = vxpose.xlu0.b32.start.end [1/1] (short) (narrow) %v613_v7, 8  ;;  %v750_v7 = vcombine.high %v705_v9, %v737_v41  ;;  %v745_v34 = vcombine.low %v4748_v49, %v721_v24  ;;  %v754_v31 = vcombine.high %v5267_v44, %v5266_v62  ;;  %v770_v59 = vcombine.high %v5269_v40, %v5268_v28  ;;  %v5271_v49 = vld [vmem:[#allocation20_spill] sm:$0xff]  ;;  %v5272_v24 = vld [vmem:[#allocation18_spill] sm:$0xff] }
 0x132   : > { %v4926_v17 = vrot.slane %v5264_v10, %v4463_v4  ;;  %v849_v10 = vcombine.low %v793_v3, %v809_v26  ;;  %v5270_v39 = vcombine.high %v4476_v22, %v4536_v20  ;;  %v817_v37 = vcombine.low %v5272_v24, %v5271_v49 }
 0x133   : > { %v768_v44 = vrot.slane %v754_v31, %v4427_v55  ;;  %v784_v28 = vrot.slane %v770_v59, %v4427_v55  ;;  %v818_v22 = vcombine.high %v5272_v24, %v5271_v49  ;;  %v749_v40 = vcombine.low %v705_v9, %v737_v41  ;;  %v5275_v59 = vld [vmem:[#allocation12_spill] sm:$0xff] }
 0x134   : > { %2041 = vxpose.xlu1.b32.start.end [1/1] (short) (narrow) %v748_v13, 8  ;;  %v712_v23 = vrot.slane %v5270_v39, %v4463_v4  ;;  %v825_v62 = vrot.slane %v817_v37, %v4463_v4  ;;  %v873_v9 = vrot.slane %v865_v29, %v4463_v4 }
 0x135   : > { %1881 = vxpose.xlu0.b32.start.end [1/1] (short) (narrow) %v615_v8, 8  ;;  %v5265_v8 = vcombine.high %v4600_v2, %v4649_v12  ;;  %v747_v2 = vcombine.low %v4754_v16, %v728_v38  ;;  %v857_v12 = vrot.slane %v849_v10, %v4463_v4  ;;  %v5274_v16 = vld [vmem:[#allocation9_spill] sm:$0xff]  ;;  %v834_v49 = vcombine.high %v768_v44, %v784_v28 }
 0x137   : > { %v744_v13 = vrot.slane %v5265_v8, %v4463_v4  ;;  %v850_v8 = vcombine.high %v793_v3, %v809_v26  ;;  %v882_v20 = vcombine.high %v825_v62, %v857_v12  ;;  %v832_v3 = vrot.slane %v818_v22, %v4463_v4 }
 0x138   : > { %2105 = vxpose.xlu1.b32.start.end [1/1] (short) (narrow) %v750_v7, 8  ;;  %v5273_v7 = vld [vmem:[#allocation15_spill] sm:$0xff]  ;;  %v833_v26 = vcombine.low %v768_v44, %v784_v28  ;;  %v848_v29 = vrot.slane %v834_v49, %v4463_v4  ;;  %v5279_v49 = vld [vmem:[#allocation10_spill] sm:$0xff] }
 0x139   : > { %1945 = vxpose.xlu0.b32.start.end [1/1] (short) (narrow) %v745_v34, 8  ;;  %v752_v46 = vcombine.high %v712_v23, %v744_v13  ;;  %v864_v39 = vrot.slane %v850_v8, %v4463_v4  ;;  %v905_v38 = vcombine.low %v5274_v16, %v5273_v7  ;;  %v751_v37 = vcombine.low %v712_v23, %v744_v13 }
 0x13a   : > { %v841_v10 = vrot.slane %v833_v26, %v4463_v4  ;;  %v881_v8 = vcombine.low %v825_v62, %v857_v12  ;;  %v880_v23 = vrot.slane %v866_v48, %v4463_v4  ;;  %v906_v13 = vcombine.high %v5274_v16, %v5273_v7 }
 0x13b   : > { %v884_v34 = vcombine.high %v832_v3, %v864_v39  ;;  %v913_v41 = vrot.slane %v905_v38, %v4427_v55  ;;  %v993_v12 = vrot.slane %v985_v0, %v4463_v4 }
 0x13c   : > { %2169 = vxpose.xlu1.b32.start.end [1/1] (short) (narrow) %v752_v46, 8  ;;  %v5276_v46 = vld [vmem:[#allocation6_spill] sm:$0xff]  ;;  %v888_v28 = vcombine.high %v848_v29, %v880_v23  ;;  %v920_v30 = vrot.slane %v906_v13, %v4427_v55 }
 0x13d   : > { %2009 = vxpose.xlu0.b32.start.end [1/1] (short) (narrow) %v747_v2, 8  ;;  %v889_v31 = vcombine.low %v5276_v46, %v5275_v59  ;;  %v886_v2 = vcombine.high %v841_v10, %v873_v9  ;;  %v890_v44 = vcombine.high %v5276_v46, %v5275_v59  ;;  %v1009_v59 = vrot.slane %v1001_v36, %v4463_v4 }
 0x13f   : > { %v897_v24 = vrot.slane %v889_v31, %v4427_v55  ;;  %v904_v62 = vrot.slane %v890_v44, %v4427_v55 }
 0x140   : > { %2233 = vxpose.xlu1.b32.start.end [1/1] (short) (narrow) %v882_v20, 8  ;;  %v883_v20 = vcombine.low %v832_v3, %v864_v39  ;;  %v5277_v39 = vcombine.high %v4763_v53, %v4742_v43  ;;  %v887_v3 = vcombine.low %v848_v29, %v880_v23  ;;  %v1016_v53 = vrot.slane %v1002_v58, %v4463_v4 }
 0x141   : > { %2073 = vxpose.xlu0.b32.start.end [1/1] (short) (narrow) %v749_v40, 8  ;;  %v953_v22 = vcombine.low %v897_v24, %v913_v41  ;;  %v954_v48 = vcombine.high %v897_v24, %v913_v41  ;;  %v885_v40 = vcombine.low %v841_v10, %v873_v9  ;;  %v969_v38 = vcombine.low %v904_v62, %v920_v30  ;;  %v5278_v10 = vld [vmem:[#allocation16_spill] sm:$0xff] }
 0x142   : > { %v1000_v16 = vrot.slane %v5277_v39, %v4463_v4  ;;  %v970_v31 = vcombine.high %v904_v62, %v920_v30  ;;  %v1177_v24 = vcombine.low %v5279_v49, %v5278_v10  ;;  %v1178_v13 = vcombine.high %v5279_v49, %v5278_v10 }
 0x143   : > { %v961_v32 = vrot.slane %v953_v22, %v4463_v4  ;;  %v968_v0 = vrot.slane %v954_v48, %v4463_v4  ;;  %v977_v46 = vrot.slane %v969_v38, %v4463_v4  ;;  %v5286_v48 = vcombine.low %v4818_v56, %v4840_v63 }
 0x144   : > { %2297 = vxpose.xlu1.b32.start.end [1/1] (short) (narrow) %v884_v34, 8  ;;  %v1192_v44 = vrot.slane %v1178_v13, %v4427_v55  ;;  %v5288_v39 = vcombine.low %v4824_v27, %v4846_v18  ;;  %v5289_v63 = vcombine.high %v4638_v54, %v4680_v52 }
 0x145   : > { %2137 = vxpose.xlu0.b32.start.end [1/1] (short) (narrow) %v751_v37, 8  ;;  %v1018_v7 = vcombine.high %v961_v32, %v993_v12  ;;  %v1020_v26 = vcombine.high %v968_v0, %v1000_v16  ;;  %v1022_v34 = vcombine.high %v977_v46, %v1009_v59  ;;  %v1017_v43 = vcombine.low %v961_v32, %v993_v12 }
 0x146   : > { %v984_v37 = vrot.slane %v970_v31, %v4463_v4  ;;  %v1019_v41 = vcombine.low %v968_v0, %v1000_v16  ;;  %v1021_v36 = vcombine.low %v977_v46, %v1009_v59  ;;  %v5285_v12 = vcombine.high %v4629_v11, %v4677_v51 }
 0x147   : > { %v1288_v16 = vrot.slane %v5289_v63, %v4463_v4  ;;  %v5291_v59 = vcombine.high %v4888_v6, %v4912_v50  ;;  %v5294_v46 = vcombine.high %v4895_v57, %v4926_v17  ;;  %v5295_v31 = vcombine.low %v4888_v6, %v4912_v50 }
 0x148   : > { %2361 = vxpose.xlu1.b32.start.end [1/1] (short) (narrow) %v886_v2, 8  ;;  %v1024_v9 = vcombine.high %v984_v37, %v1016_v53  ;;  %v5280_v2 = vld [vmem:[#allocation13_spill] sm:$0xff]  ;;  %v1023_v58 = vcombine.low %v984_v37, %v1016_v53  ;;  %v1272_v30 = vrot.slane %v5285_v12, %v4463_v4  ;;  %v5297_v53 = vcombine.low %v4895_v57, %v4926_v17 }
 0x149   : > { %2201 = vxpose.xlu0.b32.start.end [1/1] (short) (narrow) %v881_v8, 8  ;;  %v1161_v21 = vcombine.low %v5281_v61, %v5280_v2  ;;  %v1185_v8 = vrot.slane %v1177_v24, %v4427_v55 }
 0x14b   : > { %v1169_v23 = vrot.slane %v1161_v21, %v4427_v55 }
 0x14c   : > { %2425 = vxpose.xlu1.b32.start.end [1/1] (short) (narrow) %v888_v28, 8 }
 0x14d   : > { %2265 = vxpose.xlu0.b32.start.end [1/1] (short) (narrow) %v883_v20, 8  ;;  %v1225_v29 = vcombine.low %v1169_v23, %v1185_v8  ;;  %v1226_v28 = vcombine.high %v1169_v23, %v1185_v8  ;;  %v5283_v20 = vcombine.high %v4824_v27, %v4846_v18  ;;  %v5290_v18 = vcombine.high %v4885_v15, %v4906_v47 }
 0x14f   : > { %v1233_v5 = vrot.slane %v1225_v29, %v4463_v4  ;;  %v1240_v62 = vrot.slane %v1226_v28, %v4463_v4 }
 0x150   : > { %2489 = vxpose.xlu1.b32.start.end [1/1] (short) (narrow) %v1018_v7, 8 }
 0x151   : > { %2329 = vxpose.xlu0.b32.start.end [1/1] (short) (narrow) %v885_v40, 8 }
 0x154   : > { %2553 = vxpose.xlu1.b32.start.end [1/1] (short) (narrow) %v1020_v26, 8 }
 0x155   : > { %2393 = vxpose.xlu0.b32.start.end [1/1] (short) (narrow) %v887_v3, 8  ;;  %v1291_v3 = vcombine.low %v1240_v62, %v1272_v30 }
 0x158   : > { %2617 = vxpose.xlu1.b32.start.end [1/1] (short) (narrow) %v1022_v34, 8  ;;  %v5296_v34 = vcombine.low %v4892_v35, %v4920_v14 }
 0x159   : > { %2457 = vxpose.xlu0.b32.start.end [1/1] (short) (narrow) %v1017_v43, 8 }
 0x15c   : > { %2681 = vxpose.xlu1.b32.start.end [1/1] (short) (narrow) %v1024_v9, 8 }
 0x15d   : > { %2521 = vxpose.xlu0.b32.start.end [1/1] (short) (narrow) %v1019_v41, 8 }
 0x160   : > { %2745 = vxpose.xlu1.b32.start.end [1/1] (short) (narrow) %v1154_v19, 8  ;;  %v1162_v19 = vcombine.high %v5281_v61, %v5280_v2 }
 0x161   : > { %2585 = vxpose.xlu0.b32.start.end [1/1] (short) (narrow) %v1021_v36, 8 }
 0x162   : > { %v1176_v60 = vrot.slane %v1162_v19, %v4427_v55 }
 0x164   : > { %2809 = vxpose.xlu1.b32.start.end [1/1] (short) (narrow) %v1156_v25, 8  ;;  %v5282_v25 = vcombine.low %v4629_v11, %v4677_v51  ;;  %v1241_v32 = vcombine.low %v1176_v60, %v1192_v44  ;;  %v1242_v7 = vcombine.high %v1176_v60, %v1192_v44 }
 0x165   : > { %2649 = vxpose.xlu0.b32.start.end [1/1] (short) (narrow) %v1023_v58, 8 }
 0x166   : > { %v1265_v22 = vrot.slane %v5282_v25, %v4463_v4  ;;  %v1249_v11 = vrot.slane %v1241_v32, %v4463_v4  ;;  %v1256_v0 = vrot.slane %v1242_v7, %v4463_v4 }
 0x168   : > { %2873 = vxpose.xlu1.b32.start.end [1/1] (short) (narrow) %v1158_v42, 8  ;;  %v5284_v42 = vcombine.low %v4854_v1, %v4857_v33  ;;  %v1292_v1 = vcombine.high %v1240_v62, %v1272_v30  ;;  %v5287_v33 = vcombine.low %v4638_v54, %v4680_v52  ;;  %v1289_v56 = vcombine.low %v1233_v5, %v1265_v22 }
 0x169   : > { %2713 = vxpose.xlu0.b32.start.end [1/1] (short) (narrow) %v1153_v45, 8  ;;  %v1290_v45 = vcombine.high %v1233_v5, %v1265_v22  ;;  %v1296_v38 = vcombine.high %v1256_v0, %v1288_v16  ;;  %v1295_v26 = vcombine.low %v1256_v0, %v1288_v16  ;;  %v5292_v54 = vcombine.high %v4892_v35, %v4920_v14 }
 0x16a   : > { %v1281_v40 = vrot.slane %v5287_v33, %v4463_v4  ;;  %v5293_v52 = vcombine.low %v4885_v15, %v4906_v47 }
 0x16c   : > { %2937 = vxpose.xlu1.b32.start.end [1/1] (short) (narrow) %v5283_v20, 8  ;;  %v1294_v51 = vcombine.high %v1249_v11, %v1281_v40  ;;  %v1293_v27 = vcombine.low %v1249_v11, %v1281_v40 }
 0x16d   : > { %2777 = vxpose.xlu0.b32.start.end [1/1] (short) (narrow) %v5284_v42, 8 }
 0x170   : > { %3001 = vxpose.xlu1.b32.start.end [1/1] (short) (narrow) %v1290_v45, 8 }
 0x171   : > { %2841 = vxpose.xlu0.b32.start.end [1/1] (short) (narrow) %v5286_v48, 8 }
 0x174   : > { %3065 = vxpose.xlu1.b32.start.end [1/1] (short) (narrow) %v1292_v1, 8 }
 0x175   : > { %2905 = vxpose.xlu0.b32.start.end [1/1] (short) (narrow) %v5288_v39, 8 }
 0x178   : > { %3129 = vxpose.xlu1.b32.start.end [1/1] (short) (narrow) %v1294_v51, 8 }
 0x179   : > { %2969 = vxpose.xlu0.b32.start.end [1/1] (short) (narrow) %v1289_v56, 8 }
 0x17c   : > { %3193 = vxpose.xlu1.b32.start.end [1/1] (short) (narrow) %v1296_v38, 8 }
 0x17d   : > { %3033 = vxpose.xlu0.b32.start.end [1/1] (short) (narrow) %v1291_v3, 8 }
 0x180   : > { %3257 = vxpose.xlu1.b32.start.end [1/1] (short) (narrow) %v5290_v18, 8 }
 0x181   : > { %3097 = vxpose.xlu0.b32.start.end [1/1] (short) (narrow) %v1293_v27, 8 }
 0x184   : > { %3321 = vxpose.xlu1.b32.start.end [1/1] (short) (narrow) %v5291_v59, 8 }
 0x185   : > { %3161 = vxpose.xlu0.b32.start.end [1/1] (short) (narrow) %v1295_v26, 8 }
 0x188   : > { %3385 = vxpose.xlu1.b32.start.end [1/1] (short) (narrow) %v5292_v54, 8 }
 0x189   : > { %3225 = vxpose.xlu0.b32.start.end [1/1] (short) (narrow) %v5293_v52, 8 }
 0x18c   : > { %3449 = vxpose.xlu1.b32.start.end [1/1] (short) (narrow) %v5294_v46, 8 }
 0x18d   : > { %3289 = vxpose.xlu0.b32.start.end [1/1] (short) (narrow) %v5295_v31, 8 }
 0x191   : > { %3353 = vxpose.xlu0.b32.start.end [1/1] (short) (narrow) %v5296_v34, 8 }
 0x194   : > { %v1481_v43 = vpop.trf.xlu1  ;;  %v1449_v15 = vpop.trf.xlu0 }
 0x195   : > { %3417 = vxpose.xlu0.b32.start.end [1/1] (short) (narrow) %v5297_v53, 8 }
 0x198   : > { %v1609_v47 = vpop.trf.xlu1 }
 0x199   : > { %v1513_v37 = vpop.trf.xlu0  ;;  %v3531_v49 = vcombine.low %v1481_v43, %v1609_v47 }
 0x19b   : > { %v3538_v2 = vrot.slane %v3531_v49, %v4427_v55 }
 0x19c   : > { %v1673_v9 = vpop.trf.xlu1 }
 0x19d   : > { %v1545_v41 = vpop.trf.xlu0 }
 0x19e   : > { %v3539_v24 = vcombine.low %v1545_v41, %v1673_v9 }
 0x1a0   : > { %v1737_v36 = vpop.trf.xlu1  ;;  %v3546_v57 = vrot.slane %v3539_v24, %v4427_v55 }
 0x1a1   : > { %v1577_v10 = vpop.trf.xlu0 }
 0x1a2   : > { %v3563_v8 = vcombine.low %v3538_v2, %v3546_v57  ;;  %v3481_v22 = vcombine.low %v1449_v15, %v1577_v10 }
 0x1a4   : > { %v1801_v6 = vpop.trf.xlu1  ;;  %v3570_v28 = vrot.slane %v3563_v8, %v4463_v4  ;;  %v3488_v12 = vrot.slane %v3481_v22, %v4427_v55 }
 0x1a5   : > { %v1641_v50 = vpop.trf.xlu0 }
 0x1a6   : > { %v3489_v23 = vcombine.low %v1513_v37, %v1641_v50 }
 0x1a8   : > { %v1865_v35 = vpop.trf.xlu1  ;;  %v3496_v20 = vrot.slane %v3489_v23, %v4427_v55 }
 0x1a9   : > { %v1705_v14 = vpop.trf.xlu0  ;;  %v3547_v17 = vcombine.low %v1737_v36, %v1865_v35 }
 0x1aa   : > { %v3513_v62 = vcombine.low %v3488_v12, %v3496_v20 }
 0x1ab   : > { %v3554_v13 = vrot.slane %v3547_v17, %v4427_v55 }
 0x1ac   : > { %v1929_v61 = vpop.trf.xlu1  ;;  %v3520_v11 = vrot.slane %v3513_v62, %v4463_v4 }
 0x1ad   : > { %v1769_v21 = vpop.trf.xlu0  ;;  %v3555_v58 = vcombine.low %v1801_v6, %v1929_v61 }
 0x1af   : > { %v3562_v29 = vrot.slane %v3555_v58, %v4427_v55 }
 0x1b0   : > { %v1993_v19 = vpop.trf.xlu1 }
 0x1b1   : > { %v1833_v25 = vpop.trf.xlu0  ;;  %v3571_v44 = vcombine.low %v3554_v13, %v3562_v29 }
 0x1b2   : > { %v3497_v5 = vcombine.low %v1705_v14, %v1833_v25 }
 0x1b3   : > { %v3578_v42 = vrot.slane %v3571_v44, %v4463_v4 }
 0x1b4   : > { %v2057_v60 = vpop.trf.xlu1  ;;  %v3504_v1 = vrot.slane %v3497_v5, %v4427_v55 }
 0x1b5   : > { %v1897_v45 = vpop.trf.xlu0  ;;  %v3579_v30 = vcombine.low %v3570_v28, %v3578_v42  ;;  %v3580_v32 = vcombine.high %v3570_v28, %v3578_v42 }
 0x1b6   : > { %v3505_v48 = vcombine.low %v1769_v21, %v1897_v45 }
 0x1b7   : > { %3890 = vst.msk [vmem:[%s5102_s4 + $0x40] sm:$0xff] %vm3881_vm0, %v3579_v30  ;;  %3894 = vst.msk [vmem:[%s5102_s4 + $0x60] sm:$0xff] %vm3881_vm0, %v3580_v32 }
 0x1b8   : > { %v3512_v33 = vrot.slane %v3505_v48, %v4427_v55  ;;  %v2121_v40 = vpop.trf.xlu1 }
 0x1b9   : > { %v1961_v7 = vpop.trf.xlu0  ;;  %v3631_v52 = vcombine.low %v1993_v19, %v2121_v40 }
 0x1ba   : > { %v3521_v39 = vcombine.low %v3504_v1, %v3512_v33 }
 0x1bb   : > { %v3638_v53 = vrot.slane %v3631_v52, %v4427_v55 }
 0x1bc   : > { %v3528_v51 = vrot.slane %v3521_v39, %v4463_v4  ;;  %v2185_v56 = vpop.trf.xlu1 }
 0x1bd   : > { %v2025_v63 = vpop.trf.xlu0  ;;  %v3639_v26 = vcombine.low %v2057_v60, %v2185_v56 }
 0x1be   : > { %v3529_v16 = vcombine.low %v3520_v11, %v3528_v51  ;;  %v3530_v0 = vcombine.high %v3520_v11, %v3528_v51 }
 0x1bf   : > { %v3646_v46 = vrot.slane %v3639_v26, %v4427_v55 }
 0x1c0   : > { %3882 = vst.msk [vmem:[%s5102_s4] sm:$0xff] %vm3881_vm0, %v3529_v16  ;;  %3886 = vst.msk [vmem:[%s5102_s4 + $0x20] sm:$0xff] %vm3881_vm0, %v3530_v0  ;;  %v2249_v38 = vpop.trf.xlu1 }
 0x1c1   : > { %v2089_v3 = vpop.trf.xlu0  ;;  %v3663_v47 = vcombine.low %v3638_v53, %v3646_v46 }
 0x1c2   : > { %v3581_v6 = vcombine.low %v1961_v7, %v2089_v3 }
 0x1c3   : > { %v3670_v49 = vrot.slane %v3663_v47, %v4463_v4 }
 0x1c4   : > { %v2313_v27 = vpop.trf.xlu1  ;;  %v3588_v17 = vrot.slane %v3581_v6, %v4427_v55 }
 0x1c5   : > { %v2153_v18 = vpop.trf.xlu0 }
 0x1c6   : > { %v3589_v37 = vcombine.low %v2025_v63, %v2153_v18 }
 0x1c8   : > { %v2377_v59 = vpop.trf.xlu1  ;;  %v3596_v24 = vrot.slane %v3589_v37, %v4427_v55 }
 0x1c9   : > { %v2217_v54 = vpop.trf.xlu0  ;;  %v3647_v31 = vcombine.low %v2249_v38, %v2377_v59 }
 0x1ca   : > { %v3613_v8 = vcombine.low %v3588_v17, %v3596_v24 }
 0x1cb   : > { %v3654_v9 = vrot.slane %v3647_v31, %v4427_v55 }
 0x1cc   : > { %v2441_v34 = vpop.trf.xlu1  ;;  %v3620_v22 = vrot.slane %v3613_v8, %v4463_v4 }
 0x1cd   : > { %v2281_v43 = vpop.trf.xlu0  ;;  %v3655_v15 = vcombine.low %v2313_v27, %v2441_v34 }
 0x1cf   : > { %v3662_v41 = vrot.slane %v3655_v15, %v4427_v55 }
 0x1d0   : > { %v2505_v36 = vpop.trf.xlu1 }
 0x1d1   : > { %v2345_v10 = vpop.trf.xlu0  ;;  %v3671_v50 = vcombine.low %v3654_v9, %v3662_v41 }
 0x1d2   : > { %v3597_v14 = vcombine.low %v2217_v54, %v2345_v10 }
 0x1d3   : > { %v3678_v35 = vrot.slane %v3671_v50, %v4463_v4 }
 0x1d4   : > { %v2569_v2 = vpop.trf.xlu1  ;;  %v3604_v23 = vrot.slane %v3597_v14, %v4427_v55 }
 0x1d5   : > { %v2409_v57 = vpop.trf.xlu0  ;;  %v3679_v61 = vcombine.low %v3670_v49, %v3678_v35  ;;  %v3680_v21 = vcombine.high %v3670_v49, %v3678_v35 }
 0x1d6   : > { %v3605_v58 = vcombine.low %v2281_v43, %v2409_v57 }
 0x1d7   : > { %3891 = vst.msk [vmem:[%s5102_s4 + $0x48] sm:$0xff] %vm3881_vm0, %v3679_v61  ;;  %3895 = vst.msk [vmem:[%s5102_s4 + $0x68] sm:$0xff] %vm3881_vm0, %v3680_v21 }
 0x1d8   : > { %v3612_v13 = vrot.slane %v3605_v58, %v4427_v55  ;;  %v2633_v29 = vpop.trf.xlu1 }
 0x1d9   : > { %v2473_v19 = vpop.trf.xlu0  ;;  %v3731_v1 = vcombine.low %v2505_v36, %v2633_v29 }
 0x1da   : > { %v3621_v25 = vcombine.low %v3604_v23, %v3612_v13 }
 0x1db   : > { %v3738_v11 = vrot.slane %v3731_v1, %v4427_v55 }
 0x1dc   : > { %v3628_v44 = vrot.slane %v3621_v25, %v4463_v4  ;;  %v2697_v28 = vpop.trf.xlu1 }
 0x1dd   : > { %v2537_v20 = vpop.trf.xlu0  ;;  %v3739_v32 = vcombine.low %v2569_v2, %v2697_v28 }
 0x1de   : > { %v3629_v42 = vcombine.low %v3620_v22, %v3628_v44  ;;  %v3630_v5 = vcombine.high %v3620_v22, %v3628_v44 }
 0x1df   : > { %v3746_v33 = vrot.slane %v3739_v32, %v4427_v55 }
 0x1e0   : > { %3883 = vst.msk [vmem:[%s5102_s4 + $0x8] sm:$0xff] %vm3881_vm0, %v3629_v42  ;;  %3887 = vst.msk [vmem:[%s5102_s4 + $0x28] sm:$0xff] %vm3881_vm0, %v3630_v5  ;;  %v2761_v60 = vpop.trf.xlu1 }
 0x1e1   : > { %v2601_v45 = vpop.trf.xlu0  ;;  %v3763_v56 = vcombine.low %v3738_v11, %v3746_v33 }
 0x1e2   : > { %v3681_v27 = vcombine.low %v2473_v19, %v2601_v45 }
 0x1e3   : > { %v3770_v26 = vrot.slane %v3763_v56, %v4463_v4 }
 0x1e4   : > { %v2825_v12 = vpop.trf.xlu1  ;;  %v3688_v34 = vrot.slane %v3681_v27, %v4427_v55 }
 0x1e5   : > { %v2665_v30 = vpop.trf.xlu0 }
 0x1e6   : > { %v3689_v63 = vcombine.low %v2537_v20, %v2665_v30 }
 0x1e8   : > { %v2889_v48 = vpop.trf.xlu1  ;;  %v3696_v59 = vrot.slane %v3689_v63, %v4427_v55 }
 0x1e9   : > { %v2729_v62 = vpop.trf.xlu0  ;;  %v3747_v40 = vcombine.low %v2761_v60, %v2889_v48 }
 0x1ea   : > { %v3713_v47 = vcombine.low %v3688_v34, %v3696_v59 }
 0x1eb   : > { %v3754_v16 = vrot.slane %v3747_v40, %v4427_v55 }
 0x1ec   : > { %v2953_v7 = vpop.trf.xlu1  ;;  %v3720_v6 = vrot.slane %v3713_v47, %v4463_v4 }
 0x1ed   : > { %v2793_v39 = vpop.trf.xlu0  ;;  %v3755_v51 = vcombine.low %v2825_v12, %v2953_v7 }
 0x1ef   : > { %v3762_v0 = vrot.slane %v3755_v51, %v4427_v55 }
 0x1f0   : > { %v3017_v38 = vpop.trf.xlu1 }
 0x1f1   : > { %v2857_v3 = vpop.trf.xlu0  ;;  %v3771_v18 = vcombine.low %v3754_v16, %v3762_v0 }
 0x1f2   : > { %v3697_v52 = vcombine.low %v2729_v62, %v2857_v3 }
 0x1f3   : > { %v3778_v54 = vrot.slane %v3771_v18, %v4463_v4 }
 0x1f4   : > { %v3081_v46 = vpop.trf.xlu1  ;;  %v3704_v37 = vrot.slane %v3697_v52, %v4427_v55 }
 0x1f5   : > { %v2921_v31 = vpop.trf.xlu0  ;;  %v3779_v43 = vcombine.low %v3770_v26, %v3778_v54  ;;  %v3780_v53 = vcombine.high %v3770_v26, %v3778_v54 }
 0x1f6   : > { %v3705_v15 = vcombine.low %v2793_v39, %v2921_v31 }
 0x1f7   : > { %3892 = vst.msk [vmem:[%s5102_s4 + $0x50] sm:$0xff] %vm3881_vm0, %v3779_v43  ;;  %3896 = vst.msk [vmem:[%s5102_s4 + $0x70] sm:$0xff] %vm3881_vm0, %v3780_v53 }
 0x1f8   : > { %v3712_v9 = vrot.slane %v3705_v15, %v4427_v55  ;;  %v3145_v41 = vpop.trf.xlu1 }
 0x1f9   : > { %v2985_v36 = vpop.trf.xlu0  ;;  %v3831_v23 = vcombine.low %v3017_v38, %v3145_v41 }
 0x1fa   : > { %v3721_v10 = vcombine.low %v3704_v37, %v3712_v9 }
 0x1fb   : > { %v3838_v22 = vrot.slane %v3831_v23, %v4427_v55 }
 0x1fc   : > { %v3728_v50 = vrot.slane %v3721_v10, %v4463_v4  ;;  %v3209_v49 = vpop.trf.xlu1 }
 0x1fd   : > { %v3049_v24 = vpop.trf.xlu0  ;;  %v3839_v21 = vcombine.low %v3081_v46, %v3209_v49 }
 0x1fe   : > { %v3729_v35 = vcombine.low %v3720_v6, %v3728_v50  ;;  %v3730_v14 = vcombine.high %v3720_v6, %v3728_v50 }
 0x1ff   : > { %v3846_v13 = vrot.slane %v3839_v21, %v4427_v55 }
 0x200   : > { %3884 = vst.msk [vmem:[%s5102_s4 + $0x10] sm:$0xff] %vm3881_vm0, %v3729_v35  ;;  %3888 = vst.msk [vmem:[%s5102_s4 + $0x30] sm:$0xff] %vm3881_vm0, %v3730_v14  ;;  %v3273_v2 = vpop.trf.xlu1 }
 0x201   : > { %v3113_v57 = vpop.trf.xlu0  ;;  %v3863_v28 = vcombine.low %v3838_v22, %v3846_v13 }
 0x202   : > { %v3781_v45 = vcombine.low %v2985_v36, %v3113_v57 }
 0x203   : > { %v3870_v30 = vrot.slane %v3863_v28, %v4463_v4 }
 0x204   : > { %v3337_v17 = vpop.trf.xlu1  ;;  %v3788_v33 = vrot.slane %v3781_v45, %v4427_v55 }
 0x205   : > { %v3177_v61 = vpop.trf.xlu0 }
 0x206   : > { %v3789_v20 = vcombine.low %v3049_v24, %v3177_v61 }
 0x208   : > { %v3401_v58 = vpop.trf.xlu1  ;;  %v3796_v32 = vrot.slane %v3789_v20, %v4427_v55 }
 0x209   : > { %v3241_v8 = vpop.trf.xlu0  ;;  %v3847_v29 = vcombine.low %v3273_v2, %v3401_v58 }
 0x20a   : > { %v3813_v11 = vcombine.low %v3788_v33, %v3796_v32 }
 0x20b   : > { %v3854_v42 = vrot.slane %v3847_v29, %v4427_v55 }
 0x20c   : > { %v3465_v19 = vpop.trf.xlu1  ;;  %v3820_v16 = vrot.slane %v3813_v11, %v4463_v4 }
 0x20d   : > { %v3305_v25 = vpop.trf.xlu0  ;;  %v3855_v44 = vcombine.low %v3337_v17, %v3465_v19 }
 0x20f   : > { %v3862_v5 = vrot.slane %v3855_v44, %v4427_v55 }
 0x211   : > { %v3369_v60 = vpop.trf.xlu0  ;;  %v3871_v12 = vcombine.low %v3854_v42, %v3862_v5 }
 0x212   : > { %v3797_v62 = vcombine.low %v3241_v8, %v3369_v60 }
 0x213   : > { %v3878_v48 = vrot.slane %v3871_v12, %v4463_v4 }
 0x214   : > { %v3804_v51 = vrot.slane %v3797_v62, %v4427_v55 }
 0x215   : > { %v3433_v1 = vpop.trf.xlu0  ;;  %v3879_v40 = vcombine.low %v3870_v30, %v3878_v48  ;;  %v3880_v7 = vcombine.high %v3870_v30, %v3878_v48 }
 0x216   : > { %v3805_v39 = vcombine.low %v3305_v25, %v3433_v1 }
 0x217   : > { %3893 = vst.msk [vmem:[%s5102_s4 + $0x58] sm:$0xff] %vm3881_vm0, %v3879_v40  ;;  %3897 = vst.msk [vmem:[%s5102_s4 + $0x78] sm:$0xff] %vm3881_vm0, %v3880_v7 }
 0x218   : > { %v3812_v56 = vrot.slane %v3805_v39, %v4427_v55 }
 0x21a   : > { %v3821_v63 = vcombine.low %v3804_v51, %v3812_v56 }
 0x21c   : > { %v3828_v0 = vrot.slane %v3821_v63, %v4463_v4 }
 0x21e   : > { %v3829_v38 = vcombine.low %v3820_v16, %v3828_v0  ;;  %v3830_v3 = vcombine.high %v3820_v16, %v3828_v0 }
 0x220   : > { %3885 = vst.msk [vmem:[%s5102_s4 + $0x18] sm:$0xff] %vm3881_vm0, %v3829_v38  ;;  %3889 = vst.msk [vmem:[%s5102_s4 + $0x38] sm:$0xff] %vm3881_vm0, %v3830_v3 }
 0x221 PF: > { %s14_s11 = sadd.s32 1, %s4152_s11   ;;  %s5298_s6 = smov %s4136_s7 }
 0x222   : > { %p11_p9 = scmp.ge.s32.totalorder %s14_s11, 4   ;;  %s5299_s7 = smov %s4140_s8 }
 0x223   : > { %s5300_s8 = smov %s4225_s18  ;;  %s5301_s9 = smov %s4148_s10 }
 0x224   : > { %s5302_s10 = smov %s5304_s13  ;;  %13 = sbr.rel (!%p11_p9) target bundleno = 4 (0x4), region = 64 }
 0x22b   :  { %3925 = vsyncpa [#allocation3], 1 }
 0x22c   :  { %3927 = vsyncpa [#allocation3 + $0x1], 1 }

</bundles_post_ra>
